<compile_context>
chip_gen: v7x
topology: tpu7x:2x2x1
jax: 0.10.0
libtpu: 0.0.40
codegen_flags: <defaults>
</compile_context>

<pallas_src>
import math

import jax
import jax.numpy as jnp
from jax.experimental import pallas as pl
from jax.experimental.pallas import tpu as pltpu


def _round_up(n, m):
    return -(-n // m) * m


def generator_kernel(x_ref, w1_ref, b1_ref, w2_ref, b2_ref, w3_ref, b3_ref, o_ref):
    # x tile arrives f32; cast to bf16 in-kernel (avoids a wrapper-side HBM pass).
    x = x_ref[...].astype(jnp.bfloat16)

    # Layer 1: Linear + ReLU (bf16 MXU inputs, f32 accumulation).
    h1 = jnp.dot(x, w1_ref[...], preferred_element_type=jnp.float32) + b1_ref[...]
    h1 = jnp.maximum(h1, 0.0)

    # Layer 2: Linear + ReLU
    h2 = jnp.dot(h1.astype(jnp.bfloat16), w2_ref[...],
                 preferred_element_type=jnp.float32) + b2_ref[...]
    h2 = jnp.maximum(h2, 0.0)

    # Layer 3: Linear + Sigmoid (exp on EUP, approx reciprocal off the VALU path).
    h3 = jnp.dot(h2.astype(jnp.bfloat16), w3_ref[...],
                 preferred_element_type=jnp.float32) + b3_ref[...]
    e = jnp.exp(-h3)
    o_ref[...] = pl.reciprocal(1.0 + e, approx=True).astype(o_ref.dtype)


def generator_forward(x, params, *, tile_b=1024, out_dtype=jnp.float32):
    """x: (B, n_z) float32. params: OUTPUT of prepare_generator_params (padded bf16/f32)."""
    w1, b1 = params["w1"], params["b1"]
    w2, b2 = params["w2"], params["b2"]
    w3, b3 = params["w3"], params["b3"]

    n_z, h1p = w1.shape
    h2p = w2.shape[1]
    n_in = w3.shape[1]
    B = x.shape[0]

    # Batch tile: multiple of 16 (bf16 sublane packing), capped at ceil(B/2) so
    # the grid always has >= 2 steps and v7x can shard the parallel axis over
    # both TensorCores. Bigger tiles only amortize per-step overhead; VMEM is
    # not a constraint on any generation here.
    tb = min(tile_b, _round_up(pl.cdiv(B, 2), 16))
    tb = max(16, _round_up(tb, 16))
    nb = pl.cdiv(B, tb)  # partial last block is masked on store by Pallas

    # Whole-array VMEM residents: loaded once, no double-buffering.
    vmem_resident = pl.BlockSpec(memory_space=pltpu.MemorySpace.VMEM)

    weight_bytes = sum(int(p.size) * p.dtype.itemsize for p in (w1, b1, w2, b2, w3, b3))
    cost = pl.CostEstimate(
        flops=2 * B * (n_z * h1p + h1p * h2p + h2p * n_in),
        transcendentals=B * n_in,
        bytes_accessed=int(x.size) * x.dtype.itemsize
        + B * n_in * jnp.dtype(out_dtype).itemsize
        + weight_bytes,
    )

    return pl.pallas_call(
        generator_kernel,
        out_shape=jax.ShapeDtypeStruct((B, n_in), out_dtype),
        grid=(nb,),
        in_specs=[
            pl.BlockSpec((tb, n_z), lambda i: (i, 0)),  # x: tiled along batch
            vmem_resident, vmem_resident,               # w1, b1
            vmem_resident, vmem_resident,               # w2, b2
            vmem_resident, vmem_resident,               # w3, b3
        ],
        out_specs=pl.BlockSpec((tb, n_in), lambda i: (i, 0)),
        compiler_params=pltpu.CompilerParams(
            dimension_semantics=("parallel",),  # v7x: shard batch across both TCs
        ),
        cost_estimate=cost,
    )(x, w1, b1, w2, b2, w3, b3)


def xavier_uniform(key, out_features, in_features, gain):
    # Matches torch.nn.init.xavier_uniform_ on a (out, in) weight matrix.
    bound = gain * math.sqrt(6.0 / (in_features + out_features))
    return jax.random.uniform(key, (out_features, in_features), jnp.float32,
                              minval=-bound, maxval=bound)


def init_generator_params(key, net_arch):
    """Raw f32 params, weights pre-transposed to (in, out) (PyTorch does x @ W.T)."""
    n_z, h1, h2, n_in = (net_arch["n_z"], net_arch["n_hidden_1"],
                         net_arch["n_hidden_2"], net_arch["n_input"])
    k1, k2, k3 = jax.random.split(key, 3)
    # weights_init in the spec: xavier_uniform(gain=0.5) weights, zero biases.
    return {
        "w1": xavier_uniform(k1, h1, n_z, 0.5).T, "b1": jnp.zeros((1, h1), jnp.float32),
        "w2": xavier_uniform(k2, h2, h1, 0.5).T, "b2": jnp.zeros((1, h2), jnp.float32),
        "w3": xavier_uniform(k3, n_in, h2, 0.5).T, "b3": jnp.zeros((1, n_in), jnp.float32),
    }


def prepare_generator_params(params):
    """ONE-TIME kernel prep (run at init / after each optimizer step, NOT per forward):
    pad hidden widths to lane-dense multiples of 128 (exact: zero weight cols/rows
    + relu(0)=0 contribute nothing) and cast weights to bf16, biases to f32."""
    w1, b1 = params["w1"], params["b1"]
    w2, b2 = params["w2"], params["b2"]
    w3, b3 = params["w3"], params["b3"]
    h1, h2 = w1.shape[1], w2.shape[1]
    h1p, h2p = _round_up(h1, 128), _round_up(h2, 128)
    return {
        "w1": jnp.pad(w1, ((0, 0), (0, h1p - h1))).astype(jnp.bfloat16),
        "b1": jnp.pad(b1, ((0, 0), (0, h1p - h1))).astype(jnp.float32),
        "w2": jnp.pad(w2, ((0, h1p - h1), (0, h2p - h2))).astype(jnp.bfloat16),
        "b2": jnp.pad(b2, ((0, 0), (0, h2p - h2))).astype(jnp.float32),
        "w3": jnp.pad(w3, ((0, h2p - h2), (0, 0))).astype(jnp.bfloat16),
        "b3": b3.astype(jnp.float32),
    }


def generator_ref(x, params):
    # Pure-JAX reference mimicking the kernel's bf16-input / f32-accumulate dots.
    bf = lambda a: a.astype(jnp.bfloat16).astype(jnp.float32)
    h1 = jnp.maximum(jnp.dot(bf(x), bf(params["w1"])) + params["b1"], 0.0)
    h2 = jnp.maximum(jnp.dot(bf(h1), bf(params["w2"])) + params["b2"], 0.0)
    h3 = jnp.dot(bf(h2), bf(params["w3"])) + params["b3"]
    return jax.nn.sigmoid(h3)


if __name__ == "__main__":
    net_arch = {"n_z": 32, "n_hidden_1": 64, "n_hidden_2": 64, "n_input": 128}
    batch = 100  # not a multiple of the tile: exercises the masked partial last block

    key = jax.random.PRNGKey(0)
    kx, kp = jax.random.split(key)
    x = jax.random.normal(kx, (batch, net_arch["n_z"]), jnp.float32)

    raw_params = init_generator_params(kp, net_arch)
    kernel_params = prepare_generator_params(raw_params)  # one-time pad + bf16 cast

    # Small tile here so the batch grid axis has several steps (incl. a partial
    # block); real WGAN generation batches use the default tile_b=1024.
    out = generator_forward(x, kernel_params, tile_b=32)
    out = jax.block_until_ready(out)

    ref = generator_ref(x, raw_params)
    assert out.shape == (batch, net_arch["n_input"])
    assert bool(jnp.all(jnp.isfinite(out)))
    assert jnp.allclose(out, ref, atol=2e-3, rtol=2e-3)

    # bf16-output path (use when the discriminator consumes bf16): halves the
    # dominant HBM writeback stream on v5e/v6e.
    out_bf16 = jax.block_until_ready(
        generator_forward(x, kernel_params, tile_b=32, out_dtype=jnp.bfloat16))
    assert jnp.allclose(out_bf16.astype(jnp.float32), ref, atol=8e-3, rtol=8e-3)

    print("KERNEL_OK")
</pallas_src>

<mosaic_0001>
module attributes {stable_mosaic.version = 11 : i64} {
  func.func @generator_kernel(%arg0: i32, %arg1: memref<32x32xf32, #tpu.memory_space<vmem>>, %arg2: memref<32x128xbf16, #tpu.memory_space<vmem>>, %arg3: memref<1x128xf32, #tpu.memory_space<vmem>>, %arg4: memref<128x128xbf16, #tpu.memory_space<vmem>>, %arg5: memref<1x128xf32, #tpu.memory_space<vmem>>, %arg6: memref<128x128xbf16, #tpu.memory_space<vmem>>, %arg7: memref<1x128xf32, #tpu.memory_space<vmem>>, %arg8: memref<32x128xf32, #tpu.memory_space<vmem>>) attributes {dimension_semantics = [#tpu.dimension_semantics<parallel>], iteration_bounds = array<i64: 4>, scalar_prefetch = 0 : i64, scratch_operands = 0 : i64, tpu.core_type = #tpu.core_type<tc>, window_params = [{transform_indices = @transform_0, window_bounds = array<i64: 32, 32>}, {pipeline_mode = #tpu.pipeline_mode<synchronous>, transform_indices = @transform_1, window_bounds = array<i64: 32, 128>}, {pipeline_mode = #tpu.pipeline_mode<synchronous>, transform_indices = @transform_2, window_bounds = array<i64: 1, 128>}, {pipeline_mode = #tpu.pipeline_mode<synchronous>, transform_indices = @transform_3, window_bounds = array<i64: 128, 128>}, {pipeline_mode = #tpu.pipeline_mode<synchronous>, transform_indices = @transform_4, window_bounds = array<i64: 1, 128>}, {pipeline_mode = #tpu.pipeline_mode<synchronous>, transform_indices = @transform_5, window_bounds = array<i64: 128, 128>}, {pipeline_mode = #tpu.pipeline_mode<synchronous>, transform_indices = @transform_6, window_bounds = array<i64: 1, 128>}, {transform_indices = @transform_7, window_bounds = array<i64: 32, 128>}]} {
    %c0 = arith.constant 0 : index
    %c0_0 = arith.constant 0 : index
    %0 = vector.load %arg1[%c0, %c0_0] : memref<32x32xf32, #tpu.memory_space<vmem>>, vector<32x32xf32>
    %1 = arith.truncf %0 : vector<32x32xf32> to vector<32x32xbf16>
    %c0_1 = arith.constant 0 : index
    %c0_2 = arith.constant 0 : index
    %2 = vector.load %arg2[%c0_1, %c0_2] : memref<32x128xbf16, #tpu.memory_space<vmem>>, vector<32x128xbf16>
    %cst = arith.constant dense<0.000000e+00> : vector<32x128xf32>
    %3 = tpu.matmul %1, %2, %cst {dimension_numbers = #tpu.dot_dimension_numbers<[1], [0], [0], [1], [0, 0, 1, 1], [], []>} : vector<32x32xbf16>, vector<32x128xbf16>, vector<32x128xf32> -> vector<32x128xf32>
    %c0_3 = arith.constant 0 : index
    %c0_4 = arith.constant 0 : index
    %4 = vector.load %arg3[%c0_3, %c0_4] : memref<1x128xf32, #tpu.memory_space<vmem>>, vector<1x128xf32>
    %5 = vector.broadcast %4 : vector<1x128xf32> to vector<32x128xf32>
    %6 = arith.addf %3, %5 : vector<32x128xf32>
    %cst_5 = arith.constant 0.000000e+00 : f32
    %7 = vector.broadcast %cst_5 : f32 to vector<32x128xf32>
    %8 = arith.maximumf %6, %7 : vector<32x128xf32>
    %9 = arith.truncf %8 : vector<32x128xf32> to vector<32x128xbf16>
    %c0_6 = arith.constant 0 : index
    %c0_7 = arith.constant 0 : index
    %10 = vector.load %arg4[%c0_6, %c0_7] : memref<128x128xbf16, #tpu.memory_space<vmem>>, vector<128x128xbf16>
    %cst_8 = arith.constant dense<0.000000e+00> : vector<32x128xf32>
    %11 = tpu.matmul %9, %10, %cst_8 {dimension_numbers = #tpu.dot_dimension_numbers<[1], [0], [0], [1], [0, 0, 1, 1], [], []>} : vector<32x128xbf16>, vector<128x128xbf16>, vector<32x128xf32> -> vector<32x128xf32>
    %c0_9 = arith.constant 0 : index
    %c0_10 = arith.constant 0 : index
    %12 = vector.load %arg5[%c0_9, %c0_10] : memref<1x128xf32, #tpu.memory_space<vmem>>, vector<1x128xf32>
    %13 = vector.broadcast %12 : vector<1x128xf32> to vector<32x128xf32>
    %14 = arith.addf %11, %13 : vector<32x128xf32>
    %cst_11 = arith.constant 0.000000e+00 : f32
    %15 = vector.broadcast %cst_11 : f32 to vector<32x128xf32>
    %16 = arith.maximumf %14, %15 : vector<32x128xf32>
    %17 = arith.truncf %16 : vector<32x128xf32> to vector<32x128xbf16>
    %c0_12 = arith.constant 0 : index
    %c0_13 = arith.constant 0 : index
    %18 = vector.load %arg6[%c0_12, %c0_13] : memref<128x128xbf16, #tpu.memory_space<vmem>>, vector<128x128xbf16>
    %cst_14 = arith.constant dense<0.000000e+00> : vector<32x128xf32>
    %19 = tpu.matmul %17, %18, %cst_14 {dimension_numbers = #tpu.dot_dimension_numbers<[1], [0], [0], [1], [0, 0, 1, 1], [], []>} : vector<32x128xbf16>, vector<128x128xbf16>, vector<32x128xf32> -> vector<32x128xf32>
    %c0_15 = arith.constant 0 : index
    %c0_16 = arith.constant 0 : index
    %20 = vector.load %arg7[%c0_15, %c0_16] : memref<1x128xf32, #tpu.memory_space<vmem>>, vector<1x128xf32>
    %21 = vector.broadcast %20 : vector<1x128xf32> to vector<32x128xf32>
    %22 = arith.addf %19, %21 : vector<32x128xf32>
    %cst_17 = arith.constant 0.000000e+00 : f32
    %23 = vector.broadcast %cst_17 : f32 to vector<32x128xf32>
    %24 = arith.subf %23, %22 : vector<32x128xf32>
    %25 = math.exp %24 : vector<32x128xf32>
    %cst_18 = arith.constant 1.000000e+00 : f32
    %26 = vector.broadcast %cst_18 : f32 to vector<32x128xf32>
    %27 = arith.addf %26, %25 : vector<32x128xf32>
    %28 = tpu.reciprocal %27 {approx = true} : vector<32x128xf32> -> vector<32x128xf32>
    %c0_19 = arith.constant 0 : index
    %c0_20 = arith.constant 0 : index
    %29 = vector.load %arg8[%c0_19, %c0_20] : memref<32x128xf32, #tpu.memory_space<vmem>>, vector<32x128xf32>
    tpu.vector_store %arg8[%c0_19, %c0_20], %28 {strides = array<i32>} : memref<32x128xf32, #tpu.memory_space<vmem>>, vector<32x128xf32>,
    return
  }
  func.func @transform_0(%arg0: i32) -> (i32, i32) {
    %c0_i32 = arith.constant 0 : i32
    %c0_i32_0 = arith.constant 0 : i32
    return %arg0, %c0_i32 : i32, i32
  }
  func.func @transform_1(%arg0: i32) -> (i32, i32) {
    %c0_i32 = arith.constant 0 : i32
    %c0_i32_0 = arith.constant 0 : i32
    %c0_i32_1 = arith.constant 0 : i32
    return %c0_i32, %c0_i32_0 : i32, i32
  }
  func.func @transform_2(%arg0: i32) -> (i32, i32) {
    %c0_i32 = arith.constant 0 : i32
    %c0_i32_0 = arith.constant 0 : i32
    %c0_i32_1 = arith.constant 0 : i32
    return %c0_i32, %c0_i32_0 : i32, i32
  }
  func.func @transform_3(%arg0: i32) -> (i32, i32) {
    %c0_i32 = arith.constant 0 : i32
    %c0_i32_0 = arith.constant 0 : i32
    %c0_i32_1 = arith.constant 0 : i32
    return %c0_i32, %c0_i32_0 : i32, i32
  }
  func.func @transform_4(%arg0: i32) -> (i32, i32) {
    %c0_i32 = arith.constant 0 : i32
    %c0_i32_0 = arith.constant 0 : i32
    %c0_i32_1 = arith.constant 0 : i32
    return %c0_i32, %c0_i32_0 : i32, i32
  }
  func.func @transform_5(%arg0: i32) -> (i32, i32) {
    %c0_i32 = arith.constant 0 : i32
    %c0_i32_0 = arith.constant 0 : i32
    %c0_i32_1 = arith.constant 0 : i32
    return %c0_i32, %c0_i32_0 : i32, i32
  }
  func.func @transform_6(%arg0: i32) -> (i32, i32) {
    %c0_i32 = arith.constant 0 : i32
    %c0_i32_0 = arith.constant 0 : i32
    %c0_i32_1 = arith.constant 0 : i32
    return %c0_i32, %c0_i32_0 : i32, i32
  }
  func.func @transform_7(%arg0: i32) -> (i32, i32) {
    %c0_i32 = arith.constant 0 : i32
    %c0_i32_0 = arith.constant 0 : i32
    return %arg0, %c0_i32 : i32, i32
  }
}

</mosaic_0001>

<bundles_post_ra>
// kernel: tpu_custom_call.1
= control target key start
LH: loop header
LB: loop body
LE: loop exit
PB: predicated region body
PF: predicated region fallthrough
CT: control target
= control target key end

     0   :  { %12 = vsyncpa [#allocation3], 0  ;;  %s1331_s0 = inlined_call_operand.vmem [shape: f32[100,32], index: 0, kind: input, shape index: {}]   ;;  %s1332_s1 = inlined_call_operand.hbm [shape: bf16[32,128], index: 1, kind: input, shape index: {}]   ;;  %s1333_s2 = inlined_call_operand.vmem [shape: f32[1,128], index: 2, kind: input, shape index: {}]   ;;  %s1334_s3 = inlined_call_operand.vmem [shape: bf16[128,128], index: 3, kind: input, shape index: {}]   ;;  %s1335_s4 = inlined_call_operand.vmem [shape: f32[1,128], index: 4, kind: input, shape index: {}]   ;;  %s1336_s5 = inlined_call_operand.vmem [shape: bf16[128,128], index: 5, kind: input, shape index: {}]   ;;  %s1337_s6 = inlined_call_operand.vmem [shape: f32[1,128], index: 6, kind: input, shape index: {}]   ;;  %s1338_s7 = inlined_call_operand.hbm [shape: f32[100,128], index: 7, kind: output, shape index: {}]  }
   0x1   :  { %13 = vsyncpa [#allocation4], 0 }
   0x2   :  { %15 = vsyncpa [#allocation4 + $0x1], 0  ;;  %s1118_s24 = smov 0   ;;  %s1120_s25 = smov 0  }
   0x3   :  { %s1122_s26 = smov 0   ;;  %s1124_s27 = smov 0  }
   0x4 LB: > { %s1139_s28 = sadd.s32 4294967295, %s1070_s27   ;;  %s775_s29 = sadd.s32 4294967294, %s1070_s27   ;;  %s1070_s27 = sphi %s1124_s27, %s1353_s27   ;;  %s1066_s26 = sphi %s1122_s26, %s1352_s26   ;;  %s1062_s25 = sphi %s1120_s25, %s1351_s25   ;;  %s1058_s24 = sphi %s1118_s24, %s1350_s24  }
   0x5   : > { %s1143_s30 = sadd.s32 1, %s1070_s27   ;;  %s180_s8 = sadd.s32 1, %s1066_s26 }
   0x6   : > { %s177_s9 = ssub.s32 %s1070_s27, %s1143_s30  ;;  %p190_p0 = scmp.ne.s32.totalorder %s1066_s26, %s1062_s25 }
   0x7   : > { %p178_p1 = scmp.eq.s32.totalorder %s177_s9, 0  ;;  %p191_p2 = scmp.eq.s32.totalorder %s1139_s28, 3 }
   0x8   : > { %p196_p3 = scmp.ne.s32.totalorder %s1062_s25, %s1058_s24  ;;  %p197_p4 = scmp.eq.s32.totalorder %s775_s29, 3 }
   0x9   : > { %s1154_s10 = scalar_select %p178_p1, %s1066_s26, %s180_s8  }
   0xa   : > { %p1156_p5 = por %p191_p2, %p190_p0  ;;  %p1160_p6 = por %p197_p4, %p196_p3 }
   0xb   : > { %p776_p7 = scmp.ge.s32.totalorder %s1070_s27, 1  ;;  %p204_p8 = scmp.lt.s32.totalorder %s1070_s27, 5 }
   0xc   : > { %s1341_s11 = scalar_select %p1156_p5, 1, 0 }
   0xd   : > { %s1342_s12 = scalar_select %p1160_p6, 1, 0 }
   0xe   : > { %p1339_p9 = scmp.eq.s32.totalorder %s1139_s28, 0  ;;  %p1167_p10 = pnand %p776_p7, %p204_p8 }
   0xf   : > { %s1072_s14 = smov [#allocation2]   ;;  %s976_s19 = scalar_lea.hbm %s1332_s1, 256 }
  0x10   : > { %s1343_s13 = scalar_select %p1167_p10, 1, 0 }
  0x11   : > { %s216_s15 = sshll.u32 %s1072_s14, 4  ;;  %p894_p11 = pneg %p1167_p10  ;;  %s217_s15 = int_to_ptr.vmem [resolvable:$true] %s216_s15 }
  0x12   : > { %p977_p13 = scmp.ne.s32.totalorder %s1332_s1, %s976_s19  ;;  %p983_p3 = scmp.lt.u32.totalorder %s976_s19, %s1332_s1 }
  0x13   : > { %p1175_p12 = pnand %p1339_p9, %p894_p11 }
  0x15   : > { %p978_p0 = pneg %p1175_p12 }
  0x17   : > { %p979_p1 = pnand %p978_p0, %p977_p13 }
  0x19   : > { %p980_p2 = pneg %p979_p1 }
  0x1b   : > { %p985_p4 = pnand %p983_p3, %p980_p2 }
  0x1d   : > { %988 = shalt.err (!%p985_p4)
}
  0x1e   : > { %s989_s29 = scalar_lea.vmem %s217_s15, 256  ;;  %p997_p9 = scmp.lt.s32.totalorder %s217_s15, %s217_s15 }
  0x1f   : > { %p990_p7 = scmp.ne.s32.totalorder %s217_s15, %s989_s29  ;;  %p998_p6 = scmp.lt.s32.totalorder %s989_s29, %s989_s29 }
  0x21   : > { %p992_p8 = pnand %p990_p7, %p978_p0  ;;  %p999_p5 = por %p998_p6, %p997_p9 }
  0x23   : > { %p993_p11 = pneg %p992_p8 }
  0x25   : > { %p1000_p10 = pnand %p999_p5, %p993_p11 }
  0x27   : > { %1003 = shalt.err (!%p1000_p10)
}
  0x28   : > { %s1073_s8 = smov 64   ;;  %s1074_s9 = smov 4  }
  0x29   : > { %897 = dma.hbm_to_vmem [thread:$0]  (!%p1175_p12), %s1332_s1, 256, %s217_s15, [#allocation3], %s1073_s8, %s1073_s8, %s1074_s9  }
  0x2a   : > { %p1345_p13 = scmp.ne.s32.totalorder %s1343_s13, 0 }
  0x2b   : > { %p1346_p1 = scmp.eq.s32.totalorder (!%p1345_p13), %s1139_s28, 0 }
  0x2c   : > { %264 = sbr.rel (%p1345_p13) target bundleno = 781 (0x30d), region = 48 }
  0x33   : > { %1049 = dma.done.wait (%p1346_p1), [#allocation3], 256   ;;  %p1347_p0 = pmov %p1346_p1 }
  0x34   : > { %s1202_s18 = sshll.u32 %s1139_s28, 2  ;;  %v942_v0 = vld [vmem:[#allocation2] sm:$0xff]   ;;  %v943_v1 = vld [vmem:[#allocation2 + $0x8] sm:$0xff]   ;;  %vm349_vm0 = vcmask 261120   ;;  %v946_v10 = vld [vmem:[%s1334_s3 + $0x10] sm:$0xff]   ;;  %s297_s20 = sand.u32 1, %s1062_s25  }
  0x35   : > { %1051 = vsyncadd (%p1347_p0), [#allocation3], 4294967040  ;;  %p305_p5 = scmp.lt.s32.totalorder %s1202_s18, 12  ;;  %841 = vmatprep.subr.bf16.mxu0 %v942_v0  ;;  %v944_v7 = vld [vmem:[%s1334_s3] sm:$0xff]   ;;  %v945_v8 = vld [vmem:[%s1334_s3 + $0x8] sm:$0xff]   ;;  %s781_s13 = sshll.u32 %s297_s20, 5 }
  0x36   : > { %842 = vmatpush3.bf16.msra.mxu0 %v942_v0  ;;  %849 = vmatprep.subr.bf16.mxu1 %v944_v7  ;;  %v947_v11 = vld [vmem:[%s1334_s3 + $0x18] sm:$0xff]   ;;  %v948_v12 = vld [vmem:[%s1334_s3 + $0x20] sm:$0xff]   ;;  %v949_v13 = vld [vmem:[%s1334_s3 + $0x28] sm:$0xff]   ;;  %s299_s22 = scalar_lea.vmem [#allocation5], %s781_s13  ;;  %s1271_s23 = scalar_lea.sflag [#allocation4], %s297_s20 }
  0x37   : > { %s306_s16 = scalar_select %p305_p5, %s1202_s18, 12  ;;  %843 = vmatprep.subr.bf16.mxu0 %v943_v1  ;;  %850 = vmatpush3.bf16.msra.mxu1 %v944_v7  ;;  %v950_v14 = vld [vmem:[%s1334_s3 + $0x30] sm:$0xff]   ;;  %v951_v15 = vld [vmem:[%s1334_s3 + $0x38] sm:$0xff]   ;;  %v952_v16 = vld [vmem:[%s1336_s5] sm:$0xff]  }
  0x38   : > { %851 = vmatprep.subr.bf16.mxu1 %v945_v8  ;;  %v953_v17 = vld [vmem:[%s1336_s5 + $0x8] sm:$0xff]   ;;  %v954_v18 = vld [vmem:[%s1336_s5 + $0x10] sm:$0xff]   ;;  %v955_v19 = vld [vmem:[%s1336_s5 + $0x18] sm:$0xff]   ;;  %p1348_p6 = scmp.ne.s32.totalorder %s1341_s11, 0 }
  0x39   : > { %s783_s19 = sshll.u32 %s306_s16, 3  ;;  %v956_v20 = vld [vmem:[%s1336_s5 + $0x20] sm:$0xff]   ;;  %v957_v21 = vld [vmem:[%s1336_s5 + $0x28] sm:$0xff]   ;;  %v958_v37 = vld [vmem:[%s1336_s5 + $0x30] sm:$0xff]   ;;  %s690_s29 = ssub.s32 (%p1348_p6), 13, %s1202_s18 }
  0x3a   : > { %s308_s15 = scalar_lea.vmem %s1331_s0, %s783_s19  ;;  %844 = vmatpush3.bf16.msra.mxu0 %v943_v1  ;;  %v784_v22 = vld [vmem:[%s1333_s2] ss:$0 sm:$0xff]  ;;  %v959_v38 = vld [vmem:[%s1336_s5 + $0x38] sm:$0xff]   ;;  %p691_p9 = scmp.lt.s32.totalorder (%p1348_p6), %s690_s29, 4 }
  0x3b   : > { %v320_v2 = vld [vmem:[%s308_s15] sm:$0xff]  ;;  %v321_v3 = vld [vmem:[%s308_s15 + $0x8] sm:$0xff]  ;;  %v322_v4 = vld [vmem:[%s308_s15 + $0x10] sm:$0xff]  ;;  %852 = vmatpush3.bf16.msra.mxu1 %v945_v8  ;;  %869 = vmatprep.subr.bf16.mxu0 %v952_v16 }
  0x3c   : > { %v324_v5 = vpack.c.bf16 %v321_v3, %v320_v2  ;;  %v323_v6 = vld [vmem:[%s308_s15 + $0x18] sm:$0xff]  ;;  %853 = vmatprep.subr.bf16.mxu1 %v946_v10  ;;  %v789_v39 = vld [vmem:[%s1335_s4] ss:$0 sm:$0xff] }
  0x3d   : > { %v325_v9 = vpack.c.bf16 %v323_v6, %v322_v4  ;;  %v798_v54 = vld [vmem:[%s1337_s6] ss:$0 sm:$0xff] }
  0x3e   : > { %845 = vmatprep.mubr.msk.bf16.mxu0 %vm349_vm0, %v324_v5 }
  0x3f   : > { %846 = vmatmul.mubr.msk.bf16.vlgmr.msra.gmra.mrb[0].mxu0 %vm349_vm0, %v325_v9  ;;  %854 = vmatpush3.bf16.msra.mxu1 %v946_v10 }
  0x40   : > { %855 = vmatprep.subr.bf16.mxu1 %v947_v11  ;;  %870 = vmatpush3.bf16.msra.mxu0 %v952_v16 }
  0x41   : > { %871 = vmatprep.subr.bf16.mxu0 %v953_v17 }
  0x43   : > { %856 = vmatpush3.bf16.msra.mxu1 %v947_v11 }
  0x44   : > { %857 = vmatprep.subr.bf16.mxu1 %v948_v12  ;;  %872 = vmatpush3.bf16.msra.mxu0 %v953_v17 }
  0x45   : > { %873 = vmatprep.subr.bf16.mxu0 %v954_v18 }
  0x47   : > { %858 = vmatpush3.bf16.msra.mxu1 %v948_v12 }
  0x48   : > { %859 = vmatprep.subr.bf16.mxu1 %v949_v13  ;;  %874 = vmatpush3.bf16.msra.mxu0 %v954_v18 }
  0x49   : > { %875 = vmatprep.subr.bf16.mxu0 %v955_v19 }
  0x4b   : > { %860 = vmatpush3.bf16.msra.mxu1 %v949_v13 }
  0x4c   : > { %861 = vmatprep.subr.bf16.mxu1 %v950_v14  ;;  %876 = vmatpush3.bf16.msra.mxu0 %v955_v19 }
  0x4d   : > { %877 = vmatprep.subr.bf16.mxu0 %v956_v20 }
  0x4f   : > { %862 = vmatpush3.bf16.msra.mxu1 %v950_v14 }
  0x50   : > { %863 = vmatprep.subr.bf16.mxu1 %v951_v15  ;;  %878 = vmatpush3.bf16.msra.mxu0 %v956_v20 }
  0x51   : > { %879 = vmatprep.subr.bf16.mxu0 %v957_v21 }
  0x53   : > { %864 = vmatpush3.bf16.msra.mxu1 %v951_v15 }
  0x54   : > { %880 = vmatpush3.bf16.msra.mxu0 %v957_v21 }
  0x55   : > { %881 = vmatprep.subr.bf16.mxu0 %v958_v37 }
  0x58   : > { %882 = vmatpush3.bf16.msra.mxu0 %v958_v37 }
  0x59   : > { %883 = vmatprep.subr.bf16.mxu0 %v959_v38 }
  0x5c   : > { %884 = vmatpush3.bf16.msra.mxu0 %v959_v38 }
 0x112   : > { %v847_v23 = vpop.f32.mrb[0].mxu0 }
 0x113   : > { %v399_v24 = vadd.f32 %v847_v23, %v784_v22  ;;  %v390_v25 = vpop.f32.mrb[1].mxu0 }
 0x114   : > { %v391_v26 = vadd.f32 %v784_v22, %v390_v25  ;;  %v848_v27 = vpop.f32.mrb[2].mxu0 }
 0x115   : > { %v402_v28 = vadd.f32 %v848_v27, %v784_v22  ;;  %v393_v29 = vpop.f32.mrb[3].mxu0  ;;  %v407_v31 = vmax.f32 %v399_v24, 0.0 }
 0x116   : > { %v394_v30 = vadd.f32 %v784_v22, %v393_v29  ;;  %v405_v33 = vmax.f32 %v391_v26, 0.0 }
 0x117   : > { %v408_v32 = vmax.f32 %v402_v28, 0.0 }
 0x118   : > { %v406_v34 = vmax.f32 %v394_v30, 0.0 }
 0x119   : > { %v410_v35 = vpack.c.bf16 %v408_v32, %v407_v31 }
 0x11a   : > { %v409_v36 = vpack.c.bf16 %v406_v34, %v405_v33 }
 0x11c   : > { %865 = vmatprep.mubr.bf16.mxu1 %v409_v36 }
 0x11d   : > { %866 = vmatmul.mubr.bf16.vlgmr.msra.gmra.mrb[0].mxu1 %v410_v35 }
 0x1f0   : > { %v867_v40 = vpop.f32.mrb[0].mxu1 }
 0x1f1   : > { %v525_v41 = vadd.f32 %v867_v40, %v789_v39  ;;  %v516_v42 = vpop.f32.mrb[1].mxu1 }
 0x1f2   : > { %v517_v43 = vadd.f32 %v789_v39, %v516_v42  ;;  %v868_v44 = vpop.f32.mrb[2].mxu1 }
 0x1f3   : > { %v528_v45 = vadd.f32 %v868_v44, %v789_v39  ;;  %v519_v46 = vpop.f32.mrb[3].mxu1  ;;  %v533_v48 = vmax.f32 %v525_v41, 0.0 }
 0x1f4   : > { %v520_v47 = vadd.f32 %v789_v39, %v519_v46  ;;  %v531_v50 = vmax.f32 %v517_v43, 0.0 }
 0x1f5   : > { %v534_v49 = vmax.f32 %v528_v45, 0.0 }
 0x1f6   : > { %v532_v51 = vmax.f32 %v520_v47, 0.0 }
 0x1f7   : > { %v536_v52 = vpack.c.bf16 %v534_v49, %v533_v48 }
 0x1f8   : > { %v535_v53 = vpack.c.bf16 %v532_v51, %v531_v50 }
 0x1fa   : > { %885 = vmatprep.mubr.bf16.mxu0 %v535_v53 }
 0x1fb   : > { %886 = vmatmul.mubr.bf16.vlgmr.msra.gmra.mrb[4].mxu0 %v536_v52 }
 0x2ce   : > { %v887_v55 = vpop.f32.mrb[4].mxu0 }
 0x2cf   : > { %v651_v56 = vadd.f32 %v887_v55, %v798_v54  ;;  %v642_v57 = vpop.f32.mrb[5].mxu0 }
 0x2d0   : > { %v643_v58 = vadd.f32 %v798_v54, %v642_v57  ;;  %v888_v59 = vpop.f32.mrb[6].mxu0 }
 0x2d1   : > { %v659_v60 = vsub.f32 0.0, %v651_v56  ;;  %v654_v61 = vadd.f32 %v888_v59, %v798_v54  ;;  %v645_v62 = vpop.f32.mrb[7].mxu0 }
 0x2d2   : > { %v657_v63 = vsub.f32 0.0, %v643_v58  ;;  %v646_v0 = vadd.f32 %v798_v54, %v645_v62 }
 0x2d3   : > { %v665_v1 = vmul.f32 1.442695, %v659_v60  ;;  %v660_v2 = vsub.f32 0.0, %v654_v61 }
 0x2d4   : > { %v661_v3 = vmul.f32 1.442695, %v657_v63  ;;  %v658_v4 = vsub.f32 0.0, %v646_v0 }
 0x2d5   : > { %960 = vpow2.f32 %v665_v1  ;;  %v667_v5 = vmul.f32 1.442695, %v660_v2 }
 0x2d6   : > { %962 = vpow2.f32 %v661_v3  ;;  %v663_v6 = vmul.f32 1.442695, %v658_v4 }
 0x2d7   : > { %964 = vpow2.f32 %v667_v5 }
 0x2d8   : > { %966 = vpow2.f32 %v663_v6 }
 0x2df   : > { %v961_v7 = vpop.eup %960 }
 0x2e0   : > { %v963_v8 = vpop.eup %962  ;;  %v671_v9 = vadd.f32 1.0, %v961_v7 }
 0x2e1   : > { %v965_v10 = vpop.eup %964  ;;  %v669_v11 = vadd.f32 1.0, %v963_v8 }
 0x2e2   : > { %v967_v12 = vpop.eup %966  ;;  %968 = vrcp.f32 %v671_v9  ;;  %v672_v13 = vadd.f32 1.0, %v965_v10 }
 0x2e3   : > { %970 = vrcp.f32 %v669_v11  ;;  %v670_v14 = vadd.f32 1.0, %v967_v12 }
 0x2e4   : > { %972 = vrcp.f32 %v672_v13 }
 0x2e5   : > { %974 = vrcp.f32 %v670_v14 }
 0x2ea   : > { %688 = sbr.rel (!%p1348_p6) target bundleno = 781 (0x30d), region = 56 }
 0x2ec   : > { %v969_v15 = vpop.eup %968 }
 0x2ed   : > { %v971_v16 = vpop.eup %970  ;;  %679 = vst [vmem:[%s299_s22 + $0x10] sm:$0xff] %v969_v15 }
 0x2ee   : > { %v973_v17 = vpop.eup %972  ;;  %677 = vst [vmem:[%s299_s22] sm:$0xff] %v971_v16 }
 0x2ef   : > { %v975_v18 = vpop.eup %974  ;;  %680 = vst [vmem:[%s299_s22 + $0x18] sm:$0xff] %v973_v17 }
 0x2f0   : > { %678 = vst [vmem:[%s299_s22 + $0x8] sm:$0xff] %v975_v18 }
 0x2f1   : > { %s1355_s29 = smov (!%p691_p9, %s690_s29), 4 }
 0x2f2   : > { %s1276_s8 = sshll.u32 %s1355_s29, 7 }
 0x2f3   : > { %s695_s9 = ssub.s32 512, %s1276_s8 }
 0x2f4   : > { %696 = vsyncadd %s1271_s23, %s695_s9  ;;  %p810_p10 = scmp.ne.s32.totalorder %s1276_s8, 0  ;;  %s816_s14 = sshll.u32 %s1139_s28, 9 }
 0x2f5   : > { %s1285_s11 = scalar_lea.hbm %s1338_s7, %s816_s14  ;;  %s701_s19 = sshll.u32 %s299_s22, 4  ;;  %s1287_s19 = int_to_ptr.vmem [resolvable:$true] %s701_s19 }
 0x2f6   : > { %s1004_s18 = scalar_lea.vmem %s1287_s19, %s1276_s8  ;;  %s1075_s20 = smov [#allocation5]  }
 0x2f7   : > { %p1005_p12 = scmp.ne.s32.totalorder %s1287_s19, %s1004_s18  ;;  %s1008_s21 = sshll.u32 %s1075_s20, 4  ;;  %s1009_s21 = int_to_ptr.vmem [resolvable:$false] %s1008_s21 }
 0x2f8   : > { %s1010_s28 = scalar_lea.vmem %s1009_s21, 1024  ;;  %p1011_p4 = scmp.lt.s32.totalorder %s1287_s19, %s1009_s21 }
 0x2f9   : > { %p1006_p2 = pnand %p1005_p12, %p810_p10  ;;  %p1012_p7 = scmp.lt.s32.totalorder %s1010_s28, %s1004_s18 }
 0x2fb   : > { %p1007_p3 = pneg %p1006_p2  ;;  %p1013_p8 = por %p1012_p7, %p1011_p4 }
 0x2fd   : > { %p1014_p11 = pnand %p1013_p8, %p1007_p3 }
 0x2ff   : > { %1017 = shalt.err (!%p1014_p11)
}
 0x300   : > { %s1018_s15 = scalar_lea.hbm %s1285_s11, %s1276_s8  ;;  %s1022_s29 = scalar_lea.hbm %s1338_s7, 1664 }
 0x301   : > { %p1019_p13 = scmp.ne.s32.totalorder %s1285_s11, %s1018_s15  ;;  %p1023_p5 = scmp.lt.u32.totalorder %s1285_s11, %s1338_s7 }
 0x302   : > { %p1024_p6 = scmp.lt.u32.totalorder %s1022_s29, %s1018_s15  ;;  %p1026_p12 = scmp.lt.u32.totalorder %s1018_s15, %s1285_s11 }
 0x303   : > { %p1020_p1 = pnand %p1019_p13, %p810_p10 }
 0x304   : > { %p1025_p9 = por %p1024_p6, %p1023_p5 }
 0x305   : > { %p1021_p0 = pneg %p1020_p1 }
 0x306   : > { %p1027_p2 = por %p1026_p12, %p1025_p9 }
 0x308   : > { %p1028_p3 = pnand %p1027_p2, %p1021_p0 }
 0x30a   : > { %1031 = shalt.err (!%p1028_p3)
}
 0x30b   : > { %s1076_s17 = smov 128   ;;  %s1077_s16 = smov 8  }
 0x30c   : > { %707 = dma.vmem_to_hbm [thread:$0]  (%p810_p10), %s1287_s19, %s1276_s8, %s1285_s11, %s1271_s23, %s1076_s17, %s1076_s17, %s1077_s16  }
 0x30d PF: > { %p904_p4 = scmp.ge.s32.totalorder %s1070_s27, 2  ;;  %s716_s18 = sand.u32 1, %s1058_s24  }
 0x30e   : > { %p1349_p7 = scmp.ne.s32.totalorder %s1342_s12, 0  ;;  %s717_s20 = scalar_lea.sflag [#allocation4], %s716_s18 }
 0x310   : > { %p899_p8 = pnand %p904_p4, %p1349_p7 }
 0x312   : > { %1053 = dma.done.wait (!%p899_p8), %s717_s20, 512  }
 0x313   : > { %1055 = vsyncadd (!%p899_p8), %s717_s20, 4294966784  ;;  %p18_p11 = scmp.ge.s32.totalorder %s1143_s30, 6   ;;  %s1350_s24 = smov %s1062_s25 }
 0x314   : > { %s1351_s25 = smov %s1066_s26  ;;  %s1352_s26 = smov %s1154_s10 }
 0x315   : > { %s1353_s27 = smov %s1143_s30  ;;  %20 = sbr.rel (!%p18_p11) target bundleno = 4 (0x4), region = 88 }
 0x31c   :  { %722 = vsyncpa [#allocation3], 1 }
 0x31d   :  { %724 = vsyncpa [#allocation3 + $0x1], 1 }
 0x31e   :  { %725 = vsyncpa [#allocation4], 1 }
 0x31f   :  { %727 = vsyncpa [#allocation4 + $0x1], 1 }

</bundles_post_ra>
